<compile_context>
chip_gen: v5e
topology: v5e:2x2
jax: 0.10.0
libtpu: 0.0.40
codegen_flags: <defaults>
</compile_context>

<pallas_src>
import jax
import jax.numpy as jnp
from jax.experimental import pallas as pl
from jax.experimental.pallas import tpu as pltpu

STATE_DIM = 6                 # Acrobot-v1 observation dim
ACTION_NUM = 3                # Acrobot-v1 action space size
HIDDEN = 32
PACK = 4                      # samples packed per row: 4 * 32 hidden = 128 lanes
LANES = PACK * HIDDEN         # 128
QOUT = 4                      # output lanes reserved per packed sample
OUT_LANES = PACK * QOUT       # 16
ROW_ALIGN = PACK * 8          # batch rows per packed sublane group (32)

SELU_ALPHA = 1.6732632423543772
SELU_SCALE = 1.0507009873554805


def _cdiv(a, b):
    return -(-a // b)


def _round_up(n, m):
    return _cdiv(n, m) * m


def _selu_noscale(x):
    # SELU without the trailing scale multiply; the scale is folded into the
    # packed weights of the NEXT layer at pack time.  SELU(0) == 0 exactly, so
    # zero-padded batch rows stay harmless.
    return jnp.where(x > 0.0, x, SELU_ALPHA * jnp.exp(x) - SELU_ALPHA)


def qnet_kernel(x_ref, w1_ref, w2_ref, w3_ref, b12_ref, b3_ref, o_ref):
    """One batch tile of packed rows (4 samples per row).

    x_ref  : (TBP, 24)    4 samples concatenated per row
    w1_ref : (24, 128)    block-diagonal fc1 weights (bf16 or f32)
    w2_ref : (128, 128)   block-diagonal fc2 weights, SELU_SCALE folded in
    w3_ref : (128, 16)    block-diagonal fc3 weights, SELU_SCALE folded in
    b12_ref: (2, 128)     f32 fc1 / fc2 biases, tiled 4x along lanes
    b3_ref : (1, 16)      f32 fc3 bias, tiled 4x along lanes
    o_ref  : (TBP, 16)    f32; sample g of a row lives in lanes [4g, 4g+3)
    """
    w1 = w1_ref[...]
    wdt = w1.dtype
    x = x_ref[...].astype(wdt)

    # fc1 + SELU (un-scaled; scale folded into w2)
    h = jnp.dot(x, w1, preferred_element_type=jnp.float32) + b12_ref[0:1, :]
    h = _selu_noscale(h)
    # fc2 + SELU (un-scaled; scale folded into w3)
    h = jnp.dot(h.astype(wdt), w2_ref[...],
                preferred_element_type=jnp.float32) + b12_ref[1:2, :]
    h = _selu_noscale(h)
    # fc3 (linear head)
    out = jnp.dot(h.astype(wdt), w3_ref[...],
                  preferred_element_type=jnp.float32) + b3_ref[...]
    o_ref[...] = out.astype(o_ref.dtype)


def pack_params(params, param_dtype=jnp.bfloat16):
    """Pack the 6 Linear params into block-diagonal, lane-tiled arrays.

    Call this ONCE (outside the per-step forward path) and reuse the result.

    Returns dict:
      w1 : (24, 128)  param_dtype, 4-way block-diagonal copy of fc1 weight
      w2 : (128, 128) param_dtype, block-diagonal fc2 weight * SELU_SCALE
      w3 : (128, 16)  param_dtype, block-diagonal fc3 weight * SELU_SCALE
      b12: (2, 128)   f32, fc1 / fc2 biases tiled 4x along lanes
      b3 : (1, 16)    f32, fc3 bias tiled 4x along lanes (3 live of every 4)
    """
    w1 = params["w1"].astype(jnp.float32)
    w2 = params["w2"].astype(jnp.float32) * SELU_SCALE    # fold SELU scale
    w3 = params["w3"].astype(jnp.float32) * SELU_SCALE    # fold SELU scale
    b1 = params["b1"].reshape(-1).astype(jnp.float32)
    b2 = params["b2"].reshape(-1).astype(jnp.float32)
    b3 = params["b3"].reshape(-1).astype(jnp.float32)

    w1p = jnp.zeros((PACK * STATE_DIM, LANES), jnp.float32)
    w2p = jnp.zeros((LANES, LANES), jnp.float32)
    w3p = jnp.zeros((LANES, OUT_LANES), jnp.float32)
    b12 = jnp.zeros((2, LANES), jnp.float32)
    b3p = jnp.zeros((1, OUT_LANES), jnp.float32)
    for g in range(PACK):
        w1p = w1p.at[g * STATE_DIM:(g + 1) * STATE_DIM,
                     g * HIDDEN:(g + 1) * HIDDEN].set(w1)
        w2p = w2p.at[g * HIDDEN:(g + 1) * HIDDEN,
                     g * HIDDEN:(g + 1) * HIDDEN].set(w2)
        w3p = w3p.at[g * HIDDEN:(g + 1) * HIDDEN,
                     g * QOUT:g * QOUT + ACTION_NUM].set(w3)
        b12 = b12.at[0, g * HIDDEN:(g + 1) * HIDDEN].set(b1)
        b12 = b12.at[1, g * HIDDEN:(g + 1) * HIDDEN].set(b2)
        b3p = b3p.at[0, g * QOUT:g * QOUT + ACTION_NUM].set(b3)

    return {
        "w1": w1p.astype(param_dtype),
        "w2": w2p.astype(param_dtype),
        "w3": w3p.astype(param_dtype),
        "b12": b12,
        "b3": b3p,
    }


def qnet_forward_packed(x, packed, *, block_batch=8192):
    """x: (B, STATE_DIM) float32 -> (B, ACTION_NUM) float32.

    `packed` is the output of pack_params (pack once, reuse every call).
    block_batch: batch-tile size in ORIGINAL rows (rounded to 32). Weights are
    VMEM-resident across tiles; x / output tiles are auto double-buffered.
    """
    if x.ndim == 1:
        return qnet_forward_packed(x[None, :], packed,
                                   block_batch=block_batch)[0]
    B = x.shape[0]
    x = x.astype(jnp.float32)

    # Tile sizing (original-row units): keep >= 2 grid steps when the batch is
    # big enough so ("parallel",) can shard across both v7x TensorCores, and
    # keep batch padding well under one tile.
    tb_max = _round_up(int(block_batch), ROW_ALIGN)
    bpad_min = _round_up(B, ROW_ALIGN)
    steps = _cdiv(bpad_min, tb_max)
    if bpad_min > 2 * ROW_ALIGN:
        steps = max(steps, 2)
    tb = _round_up(_cdiv(bpad_min, steps), ROW_ALIGN)
    b_pad = tb * steps
    if b_pad != B:
        x = jnp.pad(x, ((0, b_pad - B), (0, 0)))

    # Free contiguous reshape: 4 samples per packed row.
    xp = x.reshape(b_pad // PACK, PACK * STATE_DIM)
    tbp = tb // PACK  # packed rows per tile (multiple of 8)

    out = pl.pallas_call(
        qnet_kernel,
        out_shape=jax.ShapeDtypeStruct((b_pad // PACK, OUT_LANES), jnp.float32),
        grid=(steps,),
        in_specs=[
            pl.BlockSpec((tbp, PACK * STATE_DIM), lambda i: (i, 0)),   # x: batch-tiled
            pl.BlockSpec((PACK * STATE_DIM, LANES), lambda i: (0, 0)), # w1: resident
            pl.BlockSpec((LANES, LANES), lambda i: (0, 0)),            # w2: resident
            pl.BlockSpec((LANES, OUT_LANES), lambda i: (0, 0)),        # w3: resident
            pl.BlockSpec((2, LANES), lambda i: (0, 0)),                # b1/b2: resident
            pl.BlockSpec((1, OUT_LANES), lambda i: (0, 0)),            # b3: resident
        ],
        out_specs=pl.BlockSpec((tbp, OUT_LANES), lambda i: (i, 0)),    # slim output
        compiler_params=pltpu.CompilerParams(
            dimension_semantics=("parallel",),      # megacore-shardable batch axis
            vmem_limit_bytes=32 * 1024 * 1024,
        ),
    )(xp, packed["w1"], packed["w2"], packed["w3"], packed["b12"], packed["b3"])

    # Un-pack: sample g of packed row i sits in lanes [4g, 4g+3).
    q = out.reshape(b_pad // PACK, PACK, QOUT)[:, :, :ACTION_NUM]
    return q.reshape(b_pad, ACTION_NUM)[:B]


def qnet_forward(x, params, *, block_batch=8192, param_dtype=jnp.bfloat16):
    """Convenience wrapper (packs params per call). Prefer pack_params once +
    qnet_forward_packed in hot loops."""
    return qnet_forward_packed(x, pack_params(params, param_dtype),
                               block_batch=block_batch)


def init_params(key):
    """kaiming_normal (fan_in) weights + PyTorch default Linear bias init.

    PyTorch gains: selu -> 3/4, linear -> 1. std = gain / sqrt(fan_in).
    Bias: U(-1/sqrt(fan_in), 1/sqrt(fan_in)).
    """
    ks = jax.random.split(key, 6)

    def kaiming(k, fan_in, fan_out, gain):
        std = gain / jnp.sqrt(float(fan_in))
        return jax.random.normal(k, (fan_in, fan_out), jnp.float32) * std

    def bias(k, fan_in, fan_out):
        bound = 1.0 / jnp.sqrt(float(fan_in))
        return jax.random.uniform(k, (1, fan_out), jnp.float32, -bound, bound)

    selu_gain = 3.0 / 4.0
    return {
        "w1": kaiming(ks[0], STATE_DIM, HIDDEN, selu_gain),
        "b1": bias(ks[1], STATE_DIM, HIDDEN),
        "w2": kaiming(ks[2], HIDDEN, HIDDEN, selu_gain),
        "b2": bias(ks[3], HIDDEN, HIDDEN),
        "w3": kaiming(ks[4], HIDDEN, ACTION_NUM, 1.0),
        "b3": bias(ks[5], HIDDEN, ACTION_NUM),
    }


def _selu(x):
    return SELU_SCALE * jnp.where(x > 0, x, SELU_ALPHA * (jnp.exp(x) - 1.0))


def qnet_reference(x, p):
    h1 = _selu(x @ p["w1"] + p["b1"])
    h2 = _selu(h1 @ p["w2"] + p["b2"])
    return h2 @ p["w3"] + p["b3"]


if __name__ == "__main__":
    key = jax.random.PRNGKey(0)
    pkey, xkey = jax.random.split(key)
    params = init_params(pkey)

    # Pack / pad the weights ONCE (hoisted out of the per-call path).
    packed_f32 = pack_params(params, jnp.float32)
    packed_bf16 = pack_params(params, jnp.bfloat16)   # recommended default

    # Small latency-style batch, f32 matmul operands (tight tolerance).
    batch = 8
    x = jax.random.normal(xkey, (batch, STATE_DIM), jnp.float32)
    fwd_f32 = jax.jit(lambda xx: qnet_forward_packed(xx, packed_f32))
    out = jax.block_until_ready(fwd_f32(x))
    ref = qnet_reference(x, params)
    assert out.shape == (batch, ACTION_NUM)
    assert jnp.allclose(out, ref, atol=1e-4, rtol=1e-4)

    # Larger, non-multiple-of-32 batch exercising the multi-step grid, batch
    # padding, and the default bf16 matmul-operand path.
    x_big = jax.random.normal(jax.random.PRNGKey(1), (300, STATE_DIM), jnp.float32)
    fwd_bf16 = jax.jit(lambda xx: qnet_forward_packed(xx, packed_bf16,
                                                      block_batch=128))
    out_big = jax.block_until_ready(fwd_bf16(x_big))
    ref_big = qnet_reference(x_big, params)
    assert out_big.shape == (300, ACTION_NUM)
    assert jnp.allclose(out_big, ref_big, atol=5e-2, rtol=5e-2)

    print("KERNEL_OK")
</pallas_src>

<mosaic_0001>
module attributes {stable_mosaic.version = 11 : i64} {
  func.func @qnet_kernel(%arg0: i32, %arg1: memref<8x24xf32, #tpu.memory_space<vmem>>, %arg2: memref<24x128xf32, #tpu.memory_space<vmem>>, %arg3: memref<128x128xf32, #tpu.memory_space<vmem>>, %arg4: memref<128x16xf32, #tpu.memory_space<vmem>>, %arg5: memref<2x128xf32, #tpu.memory_space<vmem>>, %arg6: memref<1x16xf32, #tpu.memory_space<vmem>>, %arg7: memref<8x16xf32, #tpu.memory_space<vmem>>) attributes {dimension_semantics = [#tpu.dimension_semantics<parallel>], iteration_bounds = array<i64: 1>, scalar_prefetch = 0 : i64, scratch_operands = 0 : i64, tpu.core_type = #tpu.core_type<tc>, window_params = [{transform_indices = @transform_0, window_bounds = array<i64: 8, 24>}, {pipeline_mode = #tpu.pipeline_mode<synchronous>, transform_indices = @transform_1, window_bounds = array<i64: 24, 128>}, {pipeline_mode = #tpu.pipeline_mode<synchronous>, transform_indices = @transform_2, window_bounds = array<i64: 128, 128>}, {pipeline_mode = #tpu.pipeline_mode<synchronous>, transform_indices = @transform_3, window_bounds = array<i64: 128, 16>}, {pipeline_mode = #tpu.pipeline_mode<synchronous>, transform_indices = @transform_4, window_bounds = array<i64: 2, 128>}, {pipeline_mode = #tpu.pipeline_mode<synchronous>, transform_indices = @transform_5, window_bounds = array<i64: 1, 16>}, {transform_indices = @transform_6, window_bounds = array<i64: 8, 16>}]} {
    %c0 = arith.constant 0 : index
    %c0_0 = arith.constant 0 : index
    %0 = vector.load %arg2[%c0, %c0_0] : memref<24x128xf32, #tpu.memory_space<vmem>>, vector<24x128xf32>
    %c0_1 = arith.constant 0 : index
    %c0_2 = arith.constant 0 : index
    %1 = vector.load %arg1[%c0_1, %c0_2] : memref<8x24xf32, #tpu.memory_space<vmem>>, vector<8x24xf32>
    %cst = arith.constant dense<0.000000e+00> : vector<8x128xf32>
    %2 = tpu.matmul %1, %0, %cst {dimension_numbers = #tpu.dot_dimension_numbers<[1], [0], [0], [1], [0, 0, 1, 1], [], []>} : vector<8x24xf32>, vector<24x128xf32>, vector<8x128xf32> -> vector<8x128xf32>
    %c0_3 = arith.constant 0 : index
    %c0_4 = arith.constant 0 : index
    %3 = vector.load %arg5[%c0_3, %c0_4] : memref<2x128xf32, #tpu.memory_space<vmem>>, vector<1x128xf32>
    %4 = vector.broadcast %3 : vector<1x128xf32> to vector<8x128xf32>
    %5 = arith.addf %2, %4 : vector<8x128xf32>
    %cst_5 = arith.constant 0.000000e+00 : f32
    %6 = vector.broadcast %cst_5 : f32 to vector<8x128xf32>
    %7 = arith.cmpf ogt, %5, %6 : vector<8x128xf32>
    %8 = math.exp %5 : vector<8x128xf32>
    %cst_6 = arith.constant 1.67326319 : f32
    %9 = vector.broadcast %cst_6 : f32 to vector<8x128xf32>
    %10 = arith.mulf %9, %8 : vector<8x128xf32>
    %cst_7 = arith.constant 1.67326319 : f32
    %11 = vector.broadcast %cst_7 : f32 to vector<8x128xf32>
    %12 = arith.subf %10, %11 : vector<8x128xf32>
    %13 = arith.select %7, %5, %12 : vector<8x128xi1>, vector<8x128xf32>
    %c0_8 = arith.constant 0 : index
    %c0_9 = arith.constant 0 : index
    %14 = vector.load %arg3[%c0_8, %c0_9] : memref<128x128xf32, #tpu.memory_space<vmem>>, vector<128x128xf32>
    %cst_10 = arith.constant dense<0.000000e+00> : vector<8x128xf32>
    %15 = tpu.matmul %13, %14, %cst_10 {dimension_numbers = #tpu.dot_dimension_numbers<[1], [0], [0], [1], [0, 0, 1, 1], [], []>} : vector<8x128xf32>, vector<128x128xf32>, vector<8x128xf32> -> vector<8x128xf32>
    %c1 = arith.constant 1 : index
    %c0_11 = arith.constant 0 : index
    %16 = vector.load %arg5[%c1, %c0_11] : memref<2x128xf32, #tpu.memory_space<vmem>>, vector<1x128xf32>
    %17 = vector.broadcast %16 : vector<1x128xf32> to vector<8x128xf32>
    %18 = arith.addf %15, %17 : vector<8x128xf32>
    %cst_12 = arith.constant 0.000000e+00 : f32
    %19 = vector.broadcast %cst_12 : f32 to vector<8x128xf32>
    %20 = arith.cmpf ogt, %18, %19 : vector<8x128xf32>
    %21 = math.exp %18 : vector<8x128xf32>
    %cst_13 = arith.constant 1.67326319 : f32
    %22 = vector.broadcast %cst_13 : f32 to vector<8x128xf32>
    %23 = arith.mulf %22, %21 : vector<8x128xf32>
    %cst_14 = arith.constant 1.67326319 : f32
    %24 = vector.broadcast %cst_14 : f32 to vector<8x128xf32>
    %25 = arith.subf %23, %24 : vector<8x128xf32>
    %26 = arith.select %20, %18, %25 : vector<8x128xi1>, vector<8x128xf32>
    %c0_15 = arith.constant 0 : index
    %c0_16 = arith.constant 0 : index
    %27 = vector.load %arg4[%c0_15, %c0_16] : memref<128x16xf32, #tpu.memory_space<vmem>>, vector<128x16xf32>
    %cst_17 = arith.constant dense<0.000000e+00> : vector<8x16xf32>
    %28 = tpu.matmul %26, %27, %cst_17 {dimension_numbers = #tpu.dot_dimension_numbers<[1], [0], [0], [1], [0, 0, 1, 1], [], []>} : vector<8x128xf32>, vector<128x16xf32>, vector<8x16xf32> -> vector<8x16xf32>
    %c0_18 = arith.constant 0 : index
    %c0_19 = arith.constant 0 : index
    %29 = vector.load %arg6[%c0_18, %c0_19] : memref<1x16xf32, #tpu.memory_space<vmem>>, vector<1x16xf32>
    %30 = vector.broadcast %29 : vector<1x16xf32> to vector<8x16xf32>
    %31 = arith.addf %28, %30 : vector<8x16xf32>
    %c0_20 = arith.constant 0 : index
    %c0_21 = arith.constant 0 : index
    %32 = vector.load %arg7[%c0_20, %c0_21] : memref<8x16xf32, #tpu.memory_space<vmem>>, vector<8x16xf32>
    tpu.vector_store %arg7[%c0_20, %c0_21], %31 {strides = array<i32>} : memref<8x16xf32, #tpu.memory_space<vmem>>, vector<8x16xf32>,
    return
  }
  func.func @transform_0(%arg0: i32) -> (i32, i32) {
    %c0_i32 = arith.constant 0 : i32
    %c0_i32_0 = arith.constant 0 : i32
    return %arg0, %c0_i32 : i32, i32
  }
  func.func @transform_1(%arg0: i32) -> (i32, i32) {
    %c0_i32 = arith.constant 0 : i32
    %c0_i32_0 = arith.constant 0 : i32
    %c0_i32_1 = arith.constant 0 : i32
    return %c0_i32, %c0_i32_0 : i32, i32
  }
  func.func @transform_2(%arg0: i32) -> (i32, i32) {
    %c0_i32 = arith.constant 0 : i32
    %c0_i32_0 = arith.constant 0 : i32
    %c0_i32_1 = arith.constant 0 : i32
    return %c0_i32, %c0_i32_0 : i32, i32
  }
  func.func @transform_3(%arg0: i32) -> (i32, i32) {
    %c0_i32 = arith.constant 0 : i32
    %c0_i32_0 = arith.constant 0 : i32
    %c0_i32_1 = arith.constant 0 : i32
    return %c0_i32, %c0_i32_0 : i32, i32
  }
  func.func @transform_4(%arg0: i32) -> (i32, i32) {
    %c0_i32 = arith.constant 0 : i32
    %c0_i32_0 = arith.constant 0 : i32
    %c0_i32_1 = arith.constant 0 : i32
    return %c0_i32, %c0_i32_0 : i32, i32
  }
  func.func @transform_5(%arg0: i32) -> (i32, i32) {
    %c0_i32 = arith.constant 0 : i32
    %c0_i32_0 = arith.constant 0 : i32
    %c0_i32_1 = arith.constant 0 : i32
    return %c0_i32, %c0_i32_0 : i32, i32
  }
  func.func @transform_6(%arg0: i32) -> (i32, i32) {
    %c0_i32 = arith.constant 0 : i32
    %c0_i32_0 = arith.constant 0 : i32
    return %arg0, %c0_i32 : i32, i32
  }
}

</mosaic_0001>

<bundles_post_ra>
// kernel: _lambda_.1
= control target key start
LH: loop header
LB: loop body
LE: loop exit
PB: predicated region body
PF: predicated region fallthrough
CT: control target
= control target key end

     0   :  { %11 = vsyncpa [#allocation3], 0  ;;  %s318_s0 = inlined_call_operand.vmem [shape: f32[8,24], index: 0, kind: input, shape index: {}]   ;;  %s319_s1 = inlined_call_operand.vmem [shape: f32[24,128], index: 1, kind: input, shape index: {}]   ;;  %s320_s2 = inlined_call_operand.hbm [shape: f32[128,128], index: 2, kind: input, shape index: {}]   ;;  %s321_s3 = inlined_call_operand.hbm [shape: f32[128,16], index: 3, kind: input, shape index: {}]   ;;  %s322_s4 = inlined_call_operand.vmem [shape: f32[2,128], index: 4, kind: input, shape index: {}]   ;;  %s323_s5 = inlined_call_operand.vmem [shape: f32[1,16], index: 5, kind: input, shape index: {}]   ;;  %s324_s6 = inlined_call_operand.vmem [shape: f32[8,16], index: 6, kind: output, shape index: {}]  }
   0x1   :  { %s21_s23 = sshll.u32 %s320_s2, 4  ;;  %s22_s23 = int_to_ptr.hbm [resolvable:$true] %s21_s23 }
   0x2   :  { %12 = vsyncpa [#allocation5], 0  ;;  %s249_s24 = smov [#allocation2]   ;;  %s34_s28 = sshll.u32 %s321_s3, 4  ;;  %s35_s28 = int_to_ptr.hbm [resolvable:$true] %s34_s28 }
   0x3   :  { %s23_s25 = sshll.u32 %s249_s24, 4  ;;  %s250_s29 = smov 128   ;;  %s24_s25 = int_to_ptr.vmem [resolvable:$true] %s23_s25 }
   0x4   :  { %s251_s30 = smov 8   ;;  %s252_s7 = smov [#allocation4]  }
   0x5   :  { %29 = dma.hbm_to_vmem [thread:$0]  %s22_s23, 2048, %s24_s25, [#allocation3], %s250_s29, %s250_s29, %s251_s30  }
   0x6   :  { %s36_s8 = sshll.u32 %s252_s7, 4  ;;  %s37_s8 = int_to_ptr.vmem [resolvable:$true] %s36_s8 }
   0x7   :  { %42 = dma.hbm_to_vmem [thread:$0]  %s35_s28, 2048, %s37_s8, [#allocation5], %s250_s29, %s250_s29, %s251_s30  }
   0x8   :  { %245 = dma.done.wait [#allocation3], 2048  }
   0x9   :  { %246 = vsyncadd [#allocation3], 4294965248 }
   0xa   :  { %247 = dma.done.wait [#allocation5], 2048  }
   0xb   :  { %248 = vsyncadd [#allocation5], 4294965248  ;;  %v57_v0 = vld [vmem:[%s319_s1 + $0x10] sm:$0xff]  ;;  %v56_v1 = vld [vmem:[%s319_s1 + $0x8] sm:$0xff]  ;;  %vm61_vm0 = vcmask 195584   ;;  %vm175_vm3 = vcmask 130048  }
   0xc   :  { %78 = vmatpush.msra.mxu0 %v57_v0  ;;  %v106_v2 = vld [vmem:[#allocation2 + $0x78] sm:$0xff]  ;;  %v105_v3 = vld [vmem:[#allocation2 + $0x70] sm:$0xff]  ;;  %v55_v4 = vld [vmem:[%s319_s1] sm:$0xff] }
   0xd   :  { %109 = vmatpush.msra.mxu1 %v106_v2  ;;  %v58_v5 = vld [vmem:[%s318_s0] sm:$0xff]  ;;  %v104_v6 = vld [vmem:[#allocation2 + $0x68] sm:$0xff]  ;;  %v102_v8 = vld [vmem:[#allocation2 + $0x58] sm:$0xff] }
   0xe   :  { %79 = vmatpush.msra.mxu0 %v56_v1  ;;  %v103_v7 = vld [vmem:[#allocation2 + $0x60] sm:$0xff]  ;;  %v101_v9 = vld [vmem:[#allocation2 + $0x50] sm:$0xff]  ;;  %v100_v10 = vld [vmem:[#allocation2 + $0x48] sm:$0xff] }
   0xf   :  { %110 = vmatpush.msra.mxu1 %v105_v3  ;;  %v99_v11 = vld [vmem:[#allocation2 + $0x40] sm:$0xff]  ;;  %v98_v12 = vld [vmem:[#allocation2 + $0x38] sm:$0xff]  ;;  %v97_v13 = vld [vmem:[#allocation2 + $0x30] sm:$0xff] }
  0x10   :  { %80 = vmatpush.msra.mxu0 %v55_v4  ;;  %v96_v14 = vld [vmem:[#allocation2 + $0x28] sm:$0xff]  ;;  %v95_v15 = vld [vmem:[#allocation2 + $0x20] sm:$0xff]  ;;  %v94_v16 = vld [vmem:[#allocation2 + $0x18] sm:$0xff] }
  0x11   :  { %183 = vmatmul.msk.f32.vlgmr.msra.gmra.mxu0 %vm61_vm0, %v58_v5  ;;  %111 = vmatpush.msra.mxu1 %v104_v6  ;;  %v93_v17 = vld [vmem:[#allocation2 + $0x10] sm:$0xff]  ;;  %v92_v18 = vld [vmem:[#allocation2 + $0x8] sm:$0xff]  ;;  %v91_v19 = vld [vmem:[#allocation2] sm:$0xff] }
  0x12   :  { %v150_v20 = vld [vmem:[#allocation4 + $0x78] sm:$0xff]  ;;  %v149_v21 = vld [vmem:[#allocation4 + $0x70] sm:$0xff]  ;;  %v148_v22 = vld [vmem:[#allocation4 + $0x68] sm:$0xff] }
  0x13   :  { %112 = vmatpush.msra.mxu1 %v103_v7  ;;  %155 = vmatpush.msra.mxu2 %v150_v20  ;;  %v147_v23 = vld [vmem:[#allocation4 + $0x60] sm:$0xff]  ;;  %v146_v24 = vld [vmem:[#allocation4 + $0x58] sm:$0xff]  ;;  %v145_v25 = vld [vmem:[#allocation4 + $0x50] sm:$0xff] }
  0x14   :  { %v144_v26 = vld [vmem:[#allocation4 + $0x48] sm:$0xff]  ;;  %v190_v27 = vld [vmem:[%s322_s4] ss:$0 sm:$0xff]  ;;  %v142_v36 = vld [vmem:[#allocation4 + $0x38] sm:$0xff] }
  0x15   :  { %113 = vmatpush.msra.mxu1 %v102_v8  ;;  %156 = vmatpush.msra.mxu2 %v149_v21  ;;  %v143_v35 = vld [vmem:[#allocation4 + $0x40] sm:$0xff]  ;;  %v141_v37 = vld [vmem:[#allocation4 + $0x30] sm:$0xff]  ;;  %v140_v38 = vld [vmem:[#allocation4 + $0x28] sm:$0xff] }
  0x16   :  { %v139_v39 = vld [vmem:[#allocation4 + $0x20] sm:$0xff]  ;;  %v138_v40 = vld [vmem:[#allocation4 + $0x18] sm:$0xff]  ;;  %v137_v41 = vld [vmem:[#allocation4 + $0x10] sm:$0xff] }
  0x17   :  { %114 = vmatpush.msra.mxu1 %v101_v9  ;;  %157 = vmatpush.msra.mxu2 %v148_v22  ;;  %v136_v42 = vld [vmem:[#allocation4 + $0x8] sm:$0xff]  ;;  %v135_v43 = vld [vmem:[#allocation4] sm:$0xff] }
  0x18   :  { %v191_v44 = vld [vmem:[%s322_s4 + $0x1] ss:$0 sm:$0xff]  ;;  %v192_v52 = vld [vmem:[%s323_s5] ss:$0 sm:$0xff] }
  0x19   :  { %115 = vmatpush.msra.mxu1 %v100_v10  ;;  %158 = vmatpush.msra.mxu2 %v147_v23 }
  0x1b   :  { %116 = vmatpush.msra.mxu1 %v99_v11  ;;  %159 = vmatpush.msra.mxu2 %v146_v24 }
  0x1d   :  { %117 = vmatpush.msra.mxu1 %v98_v12  ;;  %160 = vmatpush.msra.mxu2 %v145_v25 }
  0x1f   :  { %118 = vmatpush.msra.mxu1 %v97_v13  ;;  %161 = vmatpush.msra.mxu2 %v144_v26 }
  0x21   :  { %119 = vmatpush.msra.mxu1 %v96_v14  ;;  %162 = vmatpush.msra.mxu2 %v143_v35 }
  0x23   :  { %120 = vmatpush.msra.mxu1 %v95_v15  ;;  %163 = vmatpush.msra.mxu2 %v142_v36 }
  0x25   :  { %121 = vmatpush.msra.mxu1 %v94_v16  ;;  %164 = vmatpush.msra.mxu2 %v141_v37 }
  0x27   :  { %122 = vmatpush.msra.mxu1 %v93_v17  ;;  %165 = vmatpush.msra.mxu2 %v140_v38 }
  0x29   :  { %123 = vmatpush.msra.mxu1 %v92_v18  ;;  %166 = vmatpush.msra.mxu2 %v139_v39 }
  0x2b   :  { %124 = vmatpush.msra.mxu1 %v91_v19  ;;  %167 = vmatpush.msra.mxu2 %v138_v40 }
  0x2d   :  { %168 = vmatpush.msra.mxu2 %v137_v41 }
  0x2f   :  { %169 = vmatpush.msra.mxu2 %v136_v42 }
  0x31   :  { %170 = vmatpush.msra.mxu2 %v135_v43 }
  0x8e   :  { %v82_v28 = vpop.f32.mrf.mxu0 }
  0x8f   :  { %v83_v29 = vadd.f32 %v190_v27, %v82_v28 }
  0x91   :  { %v86_v30 = vmul.f32 1.442695, %v83_v29  ;;  %vm85_vm1 = vcmp.gt.f32.partialorder %v83_v29, 0.0 }
  0x93   :  { %193 = vpow2.f32 %v86_v30 }
  0x99   :  { %v194_v31 = vpop.eup %193 }
  0x9a   :  { %v88_v32 = vmul.f32 1.6732632, %v194_v31 }
  0x9c   :  { %v184_v33 = vadd.f32 -1.6732632, %v88_v32 }
  0x9e   :  { %v90_v34 = vsel %vm85_vm1, %v83_v29, %v184_v33 }
  0x9f   :  { %125 = vmatmul.f32.vlgmr.msra.gmra.mxu1 %v90_v34 }
 0x11c   :  { %v126_v45 = vpop.f32.mrf.mxu1 }
 0x11d   :  { %v127_v46 = vadd.f32 %v191_v44, %v126_v45 }
 0x11f   :  { %v130_v47 = vmul.f32 1.442695, %v127_v46  ;;  %vm129_vm2 = vcmp.gt.f32.partialorder %v127_v46, 0.0 }
 0x121   :  { %195 = vpow2.f32 %v130_v47 }
 0x127   :  { %v196_v48 = vpop.eup %195 }
 0x128   :  { %v132_v49 = vmul.f32 1.6732632, %v196_v48 }
 0x12a   :  { %v185_v50 = vadd.f32 -1.6732632, %v132_v49 }
 0x12c   :  { %v134_v51 = vsel %vm129_vm2, %v127_v46, %v185_v50 }
 0x12d   :  { %171 = vmatmul.f32.vlgmr.msra.gmra.mxu2 %v134_v51 }
 0x1b0   :  { %v172_v53 = vpop.f32.mrf.mxu2 }
 0x1b1   :  { %v173_v54 = vadd.f32 %v192_v52, %v172_v53 }
 0x1b3   :  { %176 = vst.msk [vmem:[%s324_s6] sm:$0xff] %vm175_vm3, %v173_v54 }
 0x1b4   :  { %181 = vsyncpa [#allocation3], 1 }
 0x1b5   :  { %182 = vsyncpa [#allocation5], 1 }

</bundles_post_ra>
